<compile_context>
chip_gen: v5e
topology: v5e:2x2
jax: 0.10.0
libtpu: 0.0.40
codegen_flags: <defaults>
</compile_context>

<pallas_src>
import functools

import jax
import jax.numpy as jnp
from jax.experimental import pallas as pl
from jax.experimental.pallas import tpu as pltpu

_LANE = 128
_SUB = 8


def _round_up(v, m):
    return ((v + m - 1) // m) * m


def _gcn_kernel(x_ref, a_ref, w_ref, b_ref, o_ref, h_ref, *, bt, n_pad):
    # x_ref : (bt*n_pad, c_in_p)   bf16  -- batch folded into MXU M dim
    # a_ref : (tm, n_pad)          bf16  -- one row tile of the adjacency
    # w_ref : (c_in_p, c_out_p)    bf16
    # b_ref : (1, c_out_p)         f32
    # o_ref : (bt, tm, c_out_p)    f32
    # h_ref : (bt*n_pad, c_out_p)  bf16 VMEM scratch, resident across row tiles

    # Compute h = x @ W once per batch tile (row-tile index 0), keep it in VMEM.
    @pl.when(pl.program_id(1) == 0)
    def _():
        h = jnp.dot(x_ref[...], w_ref[...], preferred_element_type=jnp.float32)
        h_ref[...] = h.astype(h_ref.dtype)

    a = a_ref[...]
    bias = b_ref[...]  # f32, broadcast over rows
    for i in range(bt):  # bt is small (<=8); static unroll
        hi = h_ref[pl.ds(i * n_pad, n_pad), :]
        y = jnp.dot(a, hi, preferred_element_type=jnp.float32) + bias
        o_ref[i] = jnp.maximum(y, 0.0).astype(o_ref.dtype)


def generator_forward(x, A, W, b):
    B, N, C_in = x.shape
    C_out = W.shape[1]

    # Lane-align feature dims; sublane-align / tile the node dim.
    c_in_p = _round_up(C_in, _LANE)
    c_out_p = _round_up(C_out, _LANE)
    tm = 256 if N > 256 else _round_up(N, _SUB)   # row tile of A / output
    n_pad = _round_up(N, tm)

    # Batch tile: fold enough batches so the x@W pass sees >=~256 MXU rows.
    bt = max(1, min(B, max(1, 256 // n_pad)))
    bt = min(bt, 8)
    b_pad = _round_up(B, bt)

    # Pad + cast operands (bf16 MXU operands, f32 bias / accumulation).
    xp = jnp.pad(x, ((0, b_pad - B), (0, n_pad - N), (0, c_in_p - C_in)))
    xp = xp.astype(jnp.bfloat16).reshape(b_pad * n_pad, c_in_p)
    Ap = jnp.pad(A, ((0, n_pad - N), (0, n_pad - N))).astype(jnp.bfloat16)
    Wp = jnp.pad(W, ((0, c_in_p - C_in), (0, c_out_p - C_out))).astype(jnp.bfloat16)
    bp = jnp.pad(b, ((0, 0), (0, c_out_p - C_out))).astype(jnp.float32)

    grid = (b_pad // bt, n_pad // tm)

    flops = 2 * b_pad * n_pad * c_in_p * c_out_p + 2 * b_pad * n_pad * n_pad * c_out_p
    bytes_accessed = (
        2 * (b_pad * n_pad * c_in_p + n_pad * n_pad + c_in_p * c_out_p)
        + 4 * c_out_p
        + 4 * b_pad * n_pad * c_out_p
    )

    kernel = functools.partial(_gcn_kernel, bt=bt, n_pad=n_pad)

    out = pl.pallas_call(
        kernel,
        out_shape=jax.ShapeDtypeStruct((b_pad, n_pad, c_out_p), jnp.float32),
        grid_spec=pltpu.PrefetchScalarGridSpec(
            num_scalar_prefetch=0,
            grid=grid,
            in_specs=[
                # flattened node features for one batch tile (constant over row tiles)
                pl.BlockSpec((bt * n_pad, c_in_p), lambda bi, r: (bi, 0)),
                # one row tile of the adjacency
                pl.BlockSpec((tm, n_pad), lambda bi, r: (r, 0)),
                # grid-invariant weights / bias
                pl.BlockSpec((c_in_p, c_out_p), lambda bi, r: (0, 0)),
                pl.BlockSpec((1, c_out_p), lambda bi, r: (0, 0)),
            ],
            out_specs=pl.BlockSpec((bt, tm, c_out_p), lambda bi, r: (bi, r, 0)),
            scratch_shapes=[pltpu.VMEM((bt * n_pad, c_out_p), jnp.bfloat16)],
        ),
        compiler_params=pltpu.CompilerParams(
            # Row-tile axis must stay "arbitrary": it reuses the h scratch written
            # at r == 0.  Batch-tile axis is independent -> megacore parallel.
            dimension_semantics=("parallel", "arbitrary"),
            vmem_limit_bytes=48 * 1024 * 1024,
        ),
        cost_estimate=pl.CostEstimate(
            flops=flops, transcendentals=0, bytes_accessed=bytes_accessed
        ),
    )(xp, Ap, Wp, bp)

    return out[:B, :N, :C_out]


def reference_forward(x, A, W, b):
    # Mirrors the kernel's numerics: bf16 operands, f32 accumulation, bf16 h.
    xb = x.astype(jnp.bfloat16)
    Ab = A.astype(jnp.bfloat16)
    Wb = W.astype(jnp.bfloat16)
    h = jnp.einsum("bnc,cd->bnd", xb, Wb, preferred_element_type=jnp.float32)
    h = h.astype(jnp.bfloat16)
    y = jnp.einsum("nm,bmd->bnd", Ab, h, preferred_element_type=jnp.float32)
    y = y + b[None].astype(jnp.float32)
    return jnp.maximum(y, 0.0)


if __name__ == "__main__":
    key = jax.random.PRNGKey(0)
    k_x, k_a, k_w, k_b = jax.random.split(key, 4)

    B, N, C_in, C_out = 2, 16, 32, 32

    x = jax.random.normal(k_x, (B, N, C_in), dtype=jnp.float32)
    A = jax.random.normal(k_a, (N, N), dtype=jnp.float32)

    # Deterministic synthetic parameters.
    W = jax.random.normal(k_w, (C_in, C_out), dtype=jnp.float32) * 0.1
    b = jax.random.normal(k_b, (1, C_out), dtype=jnp.float32) * 0.01

    out = generator_forward(x, A, W, b)
    out = jax.block_until_ready(out)

    ref = reference_forward(x, A, W, b)
    assert out.shape == (B, N, C_out)
    assert jnp.allclose(out, ref, atol=1e-2, rtol=1e-2), (
        float(jnp.max(jnp.abs(out - ref)))
    )

    print("KERNEL_OK")
</pallas_src>

<mosaic_0001>
module attributes {stable_mosaic.version = 11 : i64} {
  func.func @_gcn_kernel(%arg0: i32, %arg1: i32, %arg2: memref<32x128xbf16, #tpu.memory_space<vmem>>, %arg3: memref<16x16xbf16, #tpu.memory_space<vmem>>, %arg4: memref<128x128xbf16, #tpu.memory_space<vmem>>, %arg5: memref<1x128xf32, #tpu.memory_space<vmem>>, %arg6: memref<2x16x128xf32, #tpu.memory_space<vmem>>, %arg7: memref<32x128xbf16, #tpu.memory_space<vmem>>) attributes {dimension_semantics = [#tpu.dimension_semantics<parallel>, #tpu.dimension_semantics<arbitrary>], iteration_bounds = array<i64: 1, 1>, scalar_prefetch = 0 : i64, scratch_operands = 1 : i64, tpu.core_type = #tpu.core_type<tc>, window_params = [{transform_indices = @transform_0, window_bounds = array<i64: 32, 128>}, {transform_indices = @transform_1, window_bounds = array<i64: 16, 16>}, {pipeline_mode = #tpu.pipeline_mode<synchronous>, transform_indices = @transform_2, window_bounds = array<i64: 128, 128>}, {pipeline_mode = #tpu.pipeline_mode<synchronous>, transform_indices = @transform_3, window_bounds = array<i64: 1, 128>}, {transform_indices = @transform_4, window_bounds = array<i64: 2, 16, 128>}]} {
    %c0_i32 = arith.constant 0 : i32
    %0 = arith.cmpi eq, %arg1, %c0_i32 : i32
    %1 = arith.extui %0 : i1 to i32
    %c0_i32_0 = arith.constant 0 : i32
    %2 = arith.cmpi ne, %1, %c0_i32_0 : i32
    scf.if %2 {
      %c0_15 = arith.constant 0 : index
      %c0_16 = arith.constant 0 : index
      %23 = vector.load %arg2[%c0_15, %c0_16] : memref<32x128xbf16, #tpu.memory_space<vmem>>, vector<32x128xbf16>
      %c0_17 = arith.constant 0 : index
      %c0_18 = arith.constant 0 : index
      %24 = vector.load %arg4[%c0_17, %c0_18] : memref<128x128xbf16, #tpu.memory_space<vmem>>, vector<128x128xbf16>
      %cst_19 = arith.constant dense<0.000000e+00> : vector<32x128xf32>
      %25 = tpu.matmul %23, %24, %cst_19 {dimension_numbers = #tpu.dot_dimension_numbers<[1], [0], [0], [1], [0, 0, 1, 1], [], []>} : vector<32x128xbf16>, vector<128x128xbf16>, vector<32x128xf32> -> vector<32x128xf32>
      %26 = arith.truncf %25 : vector<32x128xf32> to vector<32x128xbf16>
      %c0_20 = arith.constant 0 : index
      %c0_21 = arith.constant 0 : index
      %27 = vector.load %arg7[%c0_20, %c0_21] : memref<32x128xbf16, #tpu.memory_space<vmem>>, vector<32x128xbf16>
      tpu.vector_store %arg7[%c0_20, %c0_21], %26 {strides = array<i32>} : memref<32x128xbf16, #tpu.memory_space<vmem>>, vector<32x128xbf16>,
    } else {
    }
    %c0 = arith.constant 0 : index
    %c0_1 = arith.constant 0 : index
    %3 = vector.load %arg3[%c0, %c0_1] : memref<16x16xbf16, #tpu.memory_space<vmem>>, vector<16x16xbf16>
    %c0_2 = arith.constant 0 : index
    %c0_3 = arith.constant 0 : index
    %4 = vector.load %arg5[%c0_2, %c0_3] : memref<1x128xf32, #tpu.memory_space<vmem>>, vector<1x128xf32>
    %c0_4 = arith.constant 0 : index
    %c0_5 = arith.constant 0 : index
    %5 = vector.load %arg7[%c0_4, %c0_5] : memref<32x128xbf16, #tpu.memory_space<vmem>>, vector<16x128xbf16>
    %cst = arith.constant dense<0.000000e+00> : vector<16x128xf32>
    %6 = tpu.matmul %3, %5, %cst {dimension_numbers = #tpu.dot_dimension_numbers<[1], [0], [0], [1], [0, 0, 1, 1], [], []>} : vector<16x16xbf16>, vector<16x128xbf16>, vector<16x128xf32> -> vector<16x128xf32>
    %7 = vector.broadcast %4 : vector<1x128xf32> to vector<16x128xf32>
    %8 = arith.addf %6, %7 : vector<16x128xf32>
    %cst_6 = arith.constant 0.000000e+00 : f32
    %9 = vector.broadcast %cst_6 : f32 to vector<16x128xf32>
    %10 = arith.maximumf %8, %9 : vector<16x128xf32>
    %c0_7 = arith.constant 0 : index
    %c0_8 = arith.constant 0 : index
    %c0_9 = arith.constant 0 : index
    %11 = vector.load %arg6[%c0_7, %c0_8, %c0_9] : memref<2x16x128xf32, #tpu.memory_space<vmem>>, vector<1x16x128xf32>
    %12 = vector.shape_cast %11 : vector<1x16x128xf32> to vector<16x128xf32>
    %13 = vector.shape_cast %10 : vector<16x128xf32> to vector<1x16x128xf32>
    tpu.vector_store %arg6[%c0_7, %c0_8, %c0_9], %13 {strides = array<i32>} : memref<2x16x128xf32, #tpu.memory_space<vmem>>, vector<1x16x128xf32>,
    %c16 = arith.constant 16 : index
    %c0_10 = arith.constant 0 : index
    %14 = vector.load %arg7[%c16, %c0_10] : memref<32x128xbf16, #tpu.memory_space<vmem>>, vector<16x128xbf16>
    %cst_11 = arith.constant dense<0.000000e+00> : vector<16x128xf32>
    %15 = tpu.matmul %3, %14, %cst_11 {dimension_numbers = #tpu.dot_dimension_numbers<[1], [0], [0], [1], [0, 0, 1, 1], [], []>} : vector<16x16xbf16>, vector<16x128xbf16>, vector<16x128xf32> -> vector<16x128xf32>
    %16 = vector.broadcast %4 : vector<1x128xf32> to vector<16x128xf32>
    %17 = arith.addf %15, %16 : vector<16x128xf32>
    %cst_12 = arith.constant 0.000000e+00 : f32
    %18 = vector.broadcast %cst_12 : f32 to vector<16x128xf32>
    %19 = arith.maximumf %17, %18 : vector<16x128xf32>
    %c1 = arith.constant 1 : index
    %c0_13 = arith.constant 0 : index
    %c0_14 = arith.constant 0 : index
    %20 = vector.load %arg6[%c1, %c0_13, %c0_14] : memref<2x16x128xf32, #tpu.memory_space<vmem>>, vector<1x16x128xf32>
    %21 = vector.shape_cast %20 : vector<1x16x128xf32> to vector<16x128xf32>
    %22 = vector.shape_cast %19 : vector<16x128xf32> to vector<1x16x128xf32>
    tpu.vector_store %arg6[%c1, %c0_13, %c0_14], %22 {strides = array<i32>} : memref<2x16x128xf32, #tpu.memory_space<vmem>>, vector<1x16x128xf32>,
    return
  }
  func.func @transform_0(%arg0: i32, %arg1: i32) -> (i32, i32) {
    %c0_i32 = arith.constant 0 : i32
    %c0_i32_0 = arith.constant 0 : i32
    return %arg0, %c0_i32 : i32, i32
  }
  func.func @transform_1(%arg0: i32, %arg1: i32) -> (i32, i32) {
    %c0_i32 = arith.constant 0 : i32
    %c0_i32_0 = arith.constant 0 : i32
    return %arg1, %c0_i32 : i32, i32
  }
  func.func @transform_2(%arg0: i32, %arg1: i32) -> (i32, i32) {
    %c0_i32 = arith.constant 0 : i32
    %c0_i32_0 = arith.constant 0 : i32
    %c0_i32_1 = arith.constant 0 : i32
    return %c0_i32, %c0_i32_0 : i32, i32
  }
  func.func @transform_3(%arg0: i32, %arg1: i32) -> (i32, i32) {
    %c0_i32 = arith.constant 0 : i32
    %c0_i32_0 = arith.constant 0 : i32
    %c0_i32_1 = arith.constant 0 : i32
    return %c0_i32, %c0_i32_0 : i32, i32
  }
  func.func @transform_4(%arg0: i32, %arg1: i32) -> (i32, i32, i32) {
    %c0_i32 = arith.constant 0 : i32
    %c0_i32_0 = arith.constant 0 : i32
    return %arg0, %arg1, %c0_i32 : i32, i32, i32
  }
}

</mosaic_0001>

<bundles_post_ra>
// kernel: tpu_custom_call.1
= control target key start
LH: loop header
LB: loop body
LE: loop exit
PB: predicated region body
PF: predicated region fallthrough
CT: control target
= control target key end

     0   :  { %9 = vsyncpa [#allocation4], 0  ;;  %s510_s0 = inlined_call_operand.hbm [shape: bf16[32,128], index: 0, kind: input, shape index: {}]   ;;  %s511_s1 = inlined_call_operand.hbm [shape: bf16[16,16], index: 1, kind: input, shape index: {}]   ;;  %s512_s2 = inlined_call_operand.hbm [shape: bf16[128,128], index: 2, kind: input, shape index: {}]   ;;  %s513_s3 = inlined_call_operand.vmem [shape: f32[1,128], index: 3, kind: input, shape index: {}]   ;;  %s514_s4 = inlined_call_operand.hbm [shape: f32[2,16,128], index: 4, kind: output, shape index: {}]  }
   0x1   :  { %10 = vsyncpa [#allocation7], 0 }
   0x2   :  { %11 = vsyncpa [#allocation5], 0  ;;  %s29_s17 = sshll.u32 %s511_s1, 4  ;;  %s462_s18 = smov [#allocation6]   ;;  %s30_s17 = int_to_ptr.hbm [resolvable:$true] %s29_s17 }
   0x3   :  { %s31_s19 = sshll.u32 %s462_s18, 4  ;;  %s16_s22 = sshll.u32 %s510_s0, 4  ;;  %s32_s19 = int_to_ptr.vmem [resolvable:$true] %s31_s19  ;;  %s17_s22 = int_to_ptr.hbm [resolvable:$true] %s16_s22 }
   0x4   :  { %s463_s23 = smov 64   ;;  %s464_s24 = smov 4  }
   0x5   :  { %37 = dma.hbm_to_vmem [thread:$0]  %s30_s17, 128, %s32_s19, [#allocation7], %s463_s23, %s463_s23, %s464_s24  }
   0x6   :  { %s465_s25 = smov [#allocation3]   ;;  %s42_s29 = sshll.u32 %s512_s2, 4  ;;  %s43_s29 = int_to_ptr.hbm [resolvable:$true] %s42_s29 }
   0x7   :  { %s18_s26 = sshll.u32 %s465_s25, 4  ;;  %s466_s1 = smov [#allocation8]   ;;  %s19_s26 = int_to_ptr.vmem [resolvable:$true] %s18_s26 }
   0x8   :  { %24 = dma.hbm_to_vmem [thread:$0]  %s17_s22, 256, %s19_s26, [#allocation4], %s463_s23, %s463_s23, %s464_s24  }
   0x9   :  { %s44_s30 = sshll.u32 %s466_s1, 4  ;;  %s45_s30 = int_to_ptr.vmem [resolvable:$true] %s44_s30 }
   0xa   :  { %50 = dma.hbm_to_vmem [thread:$0]  %s43_s29, 1024, %s45_s30, [#allocation7], %s463_s23, %s463_s23, %s464_s24  }
   0xb   :  { %456 = dma.done.wait [#allocation4], 256  }
   0xc   :  { %457 = vsyncadd [#allocation4], 4294967040 }
   0xd   :  { %458 = dma.done.wait [#allocation7], 1152  }
   0xe   :  { %459 = vsyncadd [#allocation7], 4294966144  ;;  %v328_v0 = vld [vmem:[#allocation8 + $0x38] sm:$0xff]  ;;  %v327_v1 = vld [vmem:[#allocation8 + $0x30] sm:$0xff]  ;;  %vm196_vm0 = vcmask 130048   ;;  %s467_s5 = smov [#allocation9]  }
   0xf   :  { %343 = vmatpush.bf16.msra.mxu3 %v328_v0  ;;  %150 = vmatpush.bf16.msra.mxu0 %v328_v0  ;;  %v326_v2 = vld [vmem:[#allocation8 + $0x28] sm:$0xff]  ;;  %v325_v3 = vld [vmem:[#allocation8 + $0x20] sm:$0xff]  ;;  %v324_v4 = vld [vmem:[#allocation8 + $0x18] sm:$0xff]  ;;  %s249_s6 = sshll.u32 %s467_s5, 4  ;;  %s251_s9 = sshll.u32 %s514_s4, 4  ;;  %s250_s6 = int_to_ptr.vmem [resolvable:$true] %s249_s6  ;;  %s252_s9 = int_to_ptr.hbm [resolvable:$true] %s251_s9 }
  0x10   :  { %v323_v5 = vld [vmem:[#allocation8 + $0x10] sm:$0xff]  ;;  %v322_v6 = vld [vmem:[#allocation8 + $0x8] sm:$0xff]  ;;  %v321_v7 = vld [vmem:[#allocation8] sm:$0xff]  ;;  %s469_s10 = smov 8  }
  0x11   :  { %v320_v8 = vld [vmem:[#allocation3 + $0x8] sm:$0xff]  ;;  %v319_v9 = vld [vmem:[#allocation3] sm:$0xff]  ;;  %v329_v17 = vld [vmem:[#allocation6] sm:$0xff] }
  0x12   :  { %v359_v19 = vld [vmem:[%s513_s3] ss:$0 sm:$0xff]  ;;  %s468_s3 = smov 128  }
  0x13   :  { %344 = vmatpush.bf16.msra.mxu3 %v327_v1  ;;  %151 = vmatpush.bf16.msra.mxu0 %v327_v1 }
  0x17   :  { %345 = vmatpush.bf16.msra.mxu3 %v326_v2  ;;  %152 = vmatpush.bf16.msra.mxu0 %v326_v2 }
  0x1b   :  { %346 = vmatpush.bf16.msra.mxu3 %v325_v3  ;;  %153 = vmatpush.bf16.msra.mxu0 %v325_v3 }
  0x1f   :  { %347 = vmatpush.bf16.msra.mxu3 %v324_v4  ;;  %154 = vmatpush.bf16.msra.mxu0 %v324_v4 }
  0x23   :  { %348 = vmatpush.bf16.msra.mxu3 %v323_v5  ;;  %155 = vmatpush.bf16.msra.mxu0 %v323_v5 }
  0x27   :  { %349 = vmatpush.bf16.msra.mxu3 %v322_v6  ;;  %156 = vmatpush.bf16.msra.mxu0 %v322_v6 }
  0x2b   :  { %350 = vmatpush.bf16.msra.mxu3 %v321_v7  ;;  %157 = vmatpush.bf16.msra.mxu0 %v321_v7 }
  0x2e   :  { %163 = vmatmul.bf16.vlgmr.msra.gmra.mxu3 %v320_v8  ;;  %158 = vmatmul.bf16.vlgmr.msra.gmra.mxu0 %v319_v9 }
  0xab   :  { %v159_v10 = vpop.f32.mrf.mxu0 }
  0xb1   :  { %v164_v11 = vpop.f32.mrf.mxu3 }
  0xb3   :  { %v161_v12 = vpop.f32.mrf.mxu0 }
  0xb4   :  { %v335_v13 = vpack.c.bf16 %v161_v12, %v159_v10 }
  0xb6   :  { %336 = vst [vmem:[#allocation2] sm:$0xff] %v335_v13  }
  0xb9   :  { %v166_v14 = vpop.f32.mrf.mxu3 }
  0xba   :  { %v340_v15 = vpack.c.bf16 %v166_v14, %v164_v11 }
  0xbc   :  { %342 = vst [vmem:[#allocation2 + $0x8] sm:$0xff] %v340_v15  }
  0xbd   :  { %v330_v16 = vld [vmem:[#allocation2] sm:$0xff] }
  0xbe   :  { %207 = vmatpush.bf16.msra.mxu1 %v330_v16 }
  0xc1   :  { %313 = vmatmul.msk.bf16.vlgmr.msra.gmra.mxu1 %vm196_vm0, %v329_v17 }
  0xc3   :  { %v331_v18 = vld [vmem:[#allocation2 + $0x8] sm:$0xff] }
  0xc4   :  { %233 = vmatpush.bf16.msra.mxu2 %v331_v18 }
  0xc7   :  { %318 = vmatmul.msk.bf16.vlgmr.msra.gmra.mxu2 %vm196_vm0, %v329_v17 }
 0x13e   :  { %v209_v20 = vpop.f32.mrf.mxu1 }
 0x13f   :  { %v210_v21 = vadd.f32 %v359_v19, %v209_v20 }
 0x141   :  { %v214_v22 = vmax.f32 %v210_v21, 0.0 }
 0x143   :  { %216 = vst [vmem:[#allocation9] sm:$0xff] %v214_v22 }
 0x146   :  { %v211_v23 = vpop.f32.mrf.mxu1 }
 0x147   :  { %v212_v24 = vadd.f32 %v359_v19, %v211_v23 }
 0x149   :  { %v215_v25 = vmax.f32 %v212_v24, 0.0 }
 0x14a   :  { %v235_v26 = vpop.f32.mrf.mxu2 }
 0x14b   :  { %217 = vst [vmem:[#allocation9 + $0x8] sm:$0xff] %v215_v25  ;;  %v236_v27 = vadd.f32 %v359_v19, %v235_v26 }
 0x14d   :  { %v240_v28 = vmax.f32 %v236_v27, 0.0 }
 0x14f   :  { %243 = vst [vmem:[#allocation9 + $0x10] sm:$0xff] %v240_v28 }
 0x152   :  { %v237_v29 = vpop.f32.mrf.mxu2 }
 0x153   :  { %v238_v30 = vadd.f32 %v359_v19, %v237_v29 }
 0x155   :  { %v241_v31 = vmax.f32 %v238_v30, 0.0 }
 0x157   :  { %244 = vst [vmem:[#allocation9 + $0x18] sm:$0xff] %v241_v31 }
 0x158   :  { %257 = dma.vmem_to_hbm [thread:$0]  %s250_s6, 512, %s252_s9, [#allocation5], %s468_s3, %s468_s3, %s469_s10  }
 0x159   :  { %460 = dma.done.wait [#allocation5], 512  }
 0x15a   :  { %461 = vsyncadd [#allocation5], 4294966784 }
 0x15b   :  { %262 = vsyncpa [#allocation4], 1 }
 0x15c   :  { %263 = vsyncpa [#allocation7], 1 }
 0x15d   :  { %264 = vsyncpa [#allocation5], 1 }

</bundles_post_ra>
